<compile_context>
chip_gen: v6e
topology: v6e:2x2x1
jax: 0.10.0
libtpu: 0.0.40
codegen_flags: <defaults>
</compile_context>

<pallas_src>
import functools

import jax
import jax.numpy as jnp
from jax.experimental import pallas as pl
from jax.experimental.pallas import tpu as pltpu

D_PAD = 128        # padded hidden/output width (>= every layer dim: 64/32/32/24)
MAX_TILE = 2048    # cap on batch rows per grid step (VMEM is not a constraint here)


def _round_up(x, m):
    return ((x + m - 1) // m) * m


def _num_tensorcores():
    """Best-effort core count for tiling: 2 on TPU v7x (2 TCs share one Pallas
    grid via 'parallel' semantics), 1 on v5e/v6e."""
    try:
        kind = jax.devices()[0].device_kind.lower()
    except Exception:
        return 1
    return 2 if "7" in kind else 1


def _choose_tiling(batch):
    """Pick (tile, n_tiles) for the batch grid.

    Single-TC chips: the grid is a serial loop, so use one fat tile and avoid
    extra ~0.35us grid steps. v7x: two balanced tiles so both TensorCores work.
    """
    if _num_tensorcores() >= 2 and batch > 128:
        tile = min(_round_up(pl.cdiv(batch, 2), 8), MAX_TILE)
    else:
        tile = min(_round_up(batch, 8), MAX_TILE)
    n_tiles = pl.cdiv(batch, tile)
    return tile, n_tiles


def _dnn_kernel(x_ref, w_ref, b_ref, out_ref, *, feat):
    """Fused MLP on one batch tile.

    x_ref:   (BT, feat)       narrow activation tile (feat = nagents, e.g. 8)
    w_ref:   (4, 128, 128)    zero-padded weight slab (VMEM-resident constant)
    b_ref:   (4, 128)         zero-padded bias slab
    out_ref: (BT, 128)        lane-dense output tile (cols >= out_dim are 0)
    """
    x = x_ref[...]
    # Layer 1: small-K matmul against a static slice of the packed slab.
    h = jnp.dot(x, w_ref[0, :feat, :], preferred_element_type=jnp.float32)
    h = jnp.maximum(h + b_ref[0:1, :], 0.0)
    # Layers 2-3: Linear + ReLU. Zero padding keeps the extra columns exactly 0
    # through the ReLUs, so the padded math is exact.
    for i in (1, 2):
        h = jnp.dot(h, w_ref[i], preferred_element_type=jnp.float32)
        h = jnp.maximum(h + b_ref[i:i + 1, :], 0.0)
    # Final layer: Linear (no ReLU).
    out = jnp.dot(h, w_ref[3], preferred_element_type=jnp.float32) + b_ref[3:4, :]
    out_ref[...] = out.astype(out_ref.dtype)


def pack_params(params):
    """Pack per-layer weights/biases into zero-padded slabs (do this ONCE)."""
    w_slab = jnp.zeros((4, D_PAD, D_PAD), jnp.float32)
    b_slab = jnp.zeros((4, D_PAD), jnp.float32)
    for i in range(4):
        w = params[f"w{i + 1}"]            # (fan_in, fan_out)
        b = params[f"b{i + 1}"]            # (1, fan_out)
        fan_in, fan_out = w.shape
        assert fan_in <= D_PAD and fan_out <= D_PAD
        w_slab = w_slab.at[i, :fan_in, :fan_out].set(w)
        b_slab = b_slab.at[i, :fan_out].set(b[0])
    return w_slab, b_slab


@jax.jit
def dnn_forward_padded(x, w_slab, b_slab):
    """x: (batch, nagents) f32 -> (batch_pad, 128) f32 lane-dense padded output.

    Rows >= batch and columns >= out_dim are zero / ignorable. Consumers that
    can work on the padded slab should, to avoid a standalone slice pass.
    """
    batch, feat = x.shape
    assert feat <= D_PAD

    tile, n_tiles = _choose_tiling(batch)
    batch_pad = tile * n_tiles
    if batch_pad != batch:
        # Row-only pad of the narrow (feat-wide) input: negligible HBM traffic.
        x = jnp.pad(x, ((0, batch_pad - batch), (0, 0)))

    return pl.pallas_call(
        functools.partial(_dnn_kernel, feat=feat),
        out_shape=jax.ShapeDtypeStruct((batch_pad, D_PAD), jnp.float32),
        grid=(n_tiles,),
        in_specs=[
            # Narrow input: last dim equals the full array dim (legal block).
            pl.BlockSpec((tile, feat), lambda i: (i, 0)),
            # Constant block index -> weights/biases stay VMEM-resident across
            # all batch tiles (no re-DMA per grid step).
            pl.BlockSpec((4, D_PAD, D_PAD), lambda i: (0, 0, 0)),
            pl.BlockSpec((4, D_PAD), lambda i: (0, 0)),
        ],
        out_specs=pl.BlockSpec((tile, D_PAD), lambda i: (i, 0)),
        compiler_params=pltpu.CompilerParams(
            dimension_semantics=("parallel",),   # batch tiles -> both TCs on v7x
        ),
    )(x, w_slab, b_slab)


def dnn_forward(x, w_slab, b_slab, out_dim):
    """Exact module semantics: (batch, nagents) -> (batch, out_dim).

    The trailing slice is a separate XLA copy; callers on the hot path should
    prefer dnn_forward_padded and fuse the slice into their consumer.
    """
    return dnn_forward_padded(x, w_slab, b_slab)[: x.shape[0], :out_dim]


def init_params(key, nagents, n_bs, n_channel):
    """Deterministic init mimicking PyTorch nn.Linear default
    (uniform(-1/sqrt(fan_in), 1/sqrt(fan_in)))."""
    dims = [(nagents, 64), (64, 32), (32, 32), (32, n_bs * n_channel)]
    params = {}
    for i, (fan_in, fan_out) in enumerate(dims, start=1):
        key, kw, kb = jax.random.split(key, 3)
        bound = 1.0 / jnp.sqrt(jnp.float32(fan_in))
        params[f"w{i}"] = jax.random.uniform(
            kw, (fan_in, fan_out), jnp.float32, minval=-bound, maxval=bound)
        params[f"b{i}"] = jax.random.uniform(
            kb, (1, fan_out), jnp.float32, minval=-bound, maxval=bound)
    return params


def reference_forward(x, params):
    """Plain-JAX reference (matches the PyTorch forward exactly)."""
    h = jnp.maximum(x @ params["w1"] + params["b1"], 0.0)
    h = jnp.maximum(h @ params["w2"] + params["b2"], 0.0)
    h = jnp.maximum(h @ params["w3"] + params["b3"], 0.0)
    return h @ params["w4"] + params["b4"]


if __name__ == "__main__":
    # Module-consistent shapes: opt.nagents = 8, scenario.BS_Number() = 4,
    # sce.nChannel = 6 -> output dim 24. Batch = 256 exercises the batch grid
    # (one fat tile on v5e/v6e, two balanced tiles on v7x).
    nagents, n_bs, n_channel = 8, 4, 6
    out_dim = n_bs * n_channel
    batch = 256

    key = jax.random.PRNGKey(0)
    key, kx = jax.random.split(key)
    params = init_params(key, nagents, n_bs, n_channel)
    x = jax.random.normal(kx, (batch, nagents), dtype=jnp.float32)

    w_slab, b_slab = pack_params(params)       # one-time packing

    # Hot-path API: padded, lane-dense result (no standalone slice pass).
    out_pad = jax.block_until_ready(dnn_forward_padded(x, w_slab, b_slab))
    ref = reference_forward(x, params)
    assert out_pad.shape[1] == D_PAD and out_pad.shape[0] >= batch, out_pad.shape
    assert jnp.allclose(out_pad[:batch, :out_dim], ref, atol=1e-5, rtol=1e-5), \
        "mismatch vs reference"

    # Convenience API with exact module shapes.
    out = jax.block_until_ready(dnn_forward(x, w_slab, b_slab, out_dim))
    assert out.shape == (batch, out_dim), out.shape
    assert jnp.allclose(out, ref, atol=1e-5, rtol=1e-5)

    # Odd, small batch (exercises the row-pad path and a non-multiple tile).
    out_small = jax.block_until_ready(dnn_forward(x[:5], w_slab, b_slab, out_dim))
    assert jnp.allclose(out_small, ref[:5], atol=1e-5, rtol=1e-5)

    print("KERNEL_OK")
</pallas_src>

<mosaic_0001>
module attributes {stable_mosaic.version = 11 : i64} {
  func.func @_dnn_kernel(%arg0: i32, %arg1: memref<256x8xf32, #tpu.memory_space<vmem>>, %arg2: memref<4x128x128xf32, #tpu.memory_space<vmem>>, %arg3: memref<4x128xf32, #tpu.memory_space<vmem>>, %arg4: memref<256x128xf32, #tpu.memory_space<vmem>>) attributes {dimension_semantics = [#tpu.dimension_semantics<parallel>], iteration_bounds = array<i64: 1>, scalar_prefetch = 0 : i64, scratch_operands = 0 : i64, tpu.core_type = #tpu.core_type<tc>, window_params = [{transform_indices = @transform_0, window_bounds = array<i64: 256, 8>}, {pipeline_mode = #tpu.pipeline_mode<synchronous>, transform_indices = @transform_1, window_bounds = array<i64: 4, 128, 128>}, {pipeline_mode = #tpu.pipeline_mode<synchronous>, transform_indices = @transform_2, window_bounds = array<i64: 4, 128>}, {transform_indices = @transform_3, window_bounds = array<i64: 256, 128>}]} {
    %c0 = arith.constant 0 : index
    %c0_0 = arith.constant 0 : index
    %0 = vector.load %arg1[%c0, %c0_0] : memref<256x8xf32, #tpu.memory_space<vmem>>, vector<256x8xf32>
    %c0_1 = arith.constant 0 : index
    %c0_2 = arith.constant 0 : index
    %c0_3 = arith.constant 0 : index
    %1 = vector.load %arg2[%c0_1, %c0_2, %c0_3] : memref<4x128x128xf32, #tpu.memory_space<vmem>>, vector<1x8x128xf32>
    %2 = vector.shape_cast %1 : vector<1x8x128xf32> to vector<8x128xf32>
    %cst = arith.constant dense<0.000000e+00> : vector<256x128xf32>
    %3 = tpu.matmul %0, %2, %cst {dimension_numbers = #tpu.dot_dimension_numbers<[1], [0], [0], [1], [0, 0, 1, 1], [], []>} : vector<256x8xf32>, vector<8x128xf32>, vector<256x128xf32> -> vector<256x128xf32>
    %c0_4 = arith.constant 0 : index
    %c0_5 = arith.constant 0 : index
    %4 = vector.load %arg3[%c0_4, %c0_5] : memref<4x128xf32, #tpu.memory_space<vmem>>, vector<1x128xf32>
    %5 = vector.broadcast %4 : vector<1x128xf32> to vector<256x128xf32>
    %6 = arith.addf %3, %5 : vector<256x128xf32>
    %cst_6 = arith.constant 0.000000e+00 : f32
    %7 = vector.broadcast %cst_6 : f32 to vector<256x128xf32>
    %8 = arith.maximumf %6, %7 : vector<256x128xf32>
    %c1 = arith.constant 1 : index
    %c0_7 = arith.constant 0 : index
    %c0_8 = arith.constant 0 : index
    %9 = vector.load %arg2[%c1, %c0_7, %c0_8] : memref<4x128x128xf32, #tpu.memory_space<vmem>>, vector<1x128x128xf32>
    %10 = vector.shape_cast %9 : vector<1x128x128xf32> to vector<128x128xf32>
    %cst_9 = arith.constant dense<0.000000e+00> : vector<256x128xf32>
    %11 = tpu.matmul %8, %10, %cst_9 {dimension_numbers = #tpu.dot_dimension_numbers<[1], [0], [0], [1], [0, 0, 1, 1], [], []>} : vector<256x128xf32>, vector<128x128xf32>, vector<256x128xf32> -> vector<256x128xf32>
    %c1_10 = arith.constant 1 : index
    %c0_11 = arith.constant 0 : index
    %12 = vector.load %arg3[%c1_10, %c0_11] : memref<4x128xf32, #tpu.memory_space<vmem>>, vector<1x128xf32>
    %13 = vector.broadcast %12 : vector<1x128xf32> to vector<256x128xf32>
    %14 = arith.addf %11, %13 : vector<256x128xf32>
    %cst_12 = arith.constant 0.000000e+00 : f32
    %15 = vector.broadcast %cst_12 : f32 to vector<256x128xf32>
    %16 = arith.maximumf %14, %15 : vector<256x128xf32>
    %c2 = arith.constant 2 : index
    %c0_13 = arith.constant 0 : index
    %c0_14 = arith.constant 0 : index
    %17 = vector.load %arg2[%c2, %c0_13, %c0_14] : memref<4x128x128xf32, #tpu.memory_space<vmem>>, vector<1x128x128xf32>
    %18 = vector.shape_cast %17 : vector<1x128x128xf32> to vector<128x128xf32>
    %cst_15 = arith.constant dense<0.000000e+00> : vector<256x128xf32>
    %19 = tpu.matmul %16, %18, %cst_15 {dimension_numbers = #tpu.dot_dimension_numbers<[1], [0], [0], [1], [0, 0, 1, 1], [], []>} : vector<256x128xf32>, vector<128x128xf32>, vector<256x128xf32> -> vector<256x128xf32>
    %c2_16 = arith.constant 2 : index
    %c0_17 = arith.constant 0 : index
    %20 = vector.load %arg3[%c2_16, %c0_17] : memref<4x128xf32, #tpu.memory_space<vmem>>, vector<1x128xf32>
    %21 = vector.broadcast %20 : vector<1x128xf32> to vector<256x128xf32>
    %22 = arith.addf %19, %21 : vector<256x128xf32>
    %cst_18 = arith.constant 0.000000e+00 : f32
    %23 = vector.broadcast %cst_18 : f32 to vector<256x128xf32>
    %24 = arith.maximumf %22, %23 : vector<256x128xf32>
    %c3 = arith.constant 3 : index
    %c0_19 = arith.constant 0 : index
    %c0_20 = arith.constant 0 : index
    %25 = vector.load %arg2[%c3, %c0_19, %c0_20] : memref<4x128x128xf32, #tpu.memory_space<vmem>>, vector<1x128x128xf32>
    %26 = vector.shape_cast %25 : vector<1x128x128xf32> to vector<128x128xf32>
    %cst_21 = arith.constant dense<0.000000e+00> : vector<256x128xf32>
    %27 = tpu.matmul %24, %26, %cst_21 {dimension_numbers = #tpu.dot_dimension_numbers<[1], [0], [0], [1], [0, 0, 1, 1], [], []>} : vector<256x128xf32>, vector<128x128xf32>, vector<256x128xf32> -> vector<256x128xf32>
    %c3_22 = arith.constant 3 : index
    %c0_23 = arith.constant 0 : index
    %28 = vector.load %arg3[%c3_22, %c0_23] : memref<4x128xf32, #tpu.memory_space<vmem>>, vector<1x128xf32>
    %29 = vector.broadcast %28 : vector<1x128xf32> to vector<256x128xf32>
    %30 = arith.addf %27, %29 : vector<256x128xf32>
    %c0_24 = arith.constant 0 : index
    %c0_25 = arith.constant 0 : index
    %31 = vector.load %arg4[%c0_24, %c0_25] : memref<256x128xf32, #tpu.memory_space<vmem>>, vector<256x128xf32>
    tpu.vector_store %arg4[%c0_24, %c0_25], %30 {strides = array<i32>} : memref<256x128xf32, #tpu.memory_space<vmem>>, vector<256x128xf32>,
    return
  }
  func.func @transform_0(%arg0: i32) -> (i32, i32) {
    %c0_i32 = arith.constant 0 : i32
    %c0_i32_0 = arith.constant 0 : i32
    return %arg0, %c0_i32 : i32, i32
  }
  func.func @transform_1(%arg0: i32) -> (i32, i32, i32) {
    %c0_i32 = arith.constant 0 : i32
    %c0_i32_0 = arith.constant 0 : i32
    %c0_i32_1 = arith.constant 0 : i32
    %c0_i32_2 = arith.constant 0 : i32
    return %c0_i32, %c0_i32_0, %c0_i32_1 : i32, i32, i32
  }
  func.func @transform_2(%arg0: i32) -> (i32, i32) {
    %c0_i32 = arith.constant 0 : i32
    %c0_i32_0 = arith.constant 0 : i32
    %c0_i32_1 = arith.constant 0 : i32
    return %c0_i32, %c0_i32_0 : i32, i32
  }
  func.func @transform_3(%arg0: i32) -> (i32, i32) {
    %c0_i32 = arith.constant 0 : i32
    %c0_i32_0 = arith.constant 0 : i32
    return %arg0, %c0_i32 : i32, i32
  }
}

</mosaic_0001>

<bundles_post_ra>
// kernel: dnn_forward_padded.1
= control target key start
LH: loop header
LB: loop body
LE: loop exit
PB: predicated region body
PF: predicated region fallthrough
CT: control target
= control target key end

     0   :  { %8 = vsyncpa [#allocation3], 0  ;;  %s2212_s0 = inlined_call_operand.vmem [shape: f32[256,8], index: 0, kind: input, shape index: {}]   ;;  %s2213_s1 = inlined_call_operand.hbm [shape: f32[4,128,128], index: 1, kind: input, shape index: {}]   ;;  %s2214_s2 = inlined_call_operand.vmem [shape: f32[4,128], index: 2, kind: input, shape index: {}]   ;;  %s2215_s3 = inlined_call_operand.hbm [shape: f32[256,128], index: 3, kind: output, shape index: {}]  }
   0x1   :  { %9 = vsyncpa [#allocation4], 0  ;;  %s1858_s12 = smov [#allocation2]  }
   0x2   :  { %s17_s13 = sshll.u32 %s1858_s12, 4  ;;  %s18_s13 = int_to_ptr.vmem [resolvable:$true] %s17_s13 }
   0x3   :  { %s1822_s14 = scalar_lea.vmem %s18_s13, 8192  ;;  %p1827_p1 = scmp.lt.s32.totalorder %s18_s13, %s18_s13 }
   0x4   :  { %p1823_p0 = scmp.ne.s32.totalorder %s18_s13, %s1822_s14  ;;  %p1828_p2 = scmp.lt.s32.totalorder %s1822_s14, %s1822_s14 }
   0x6   :  { %p1829_p3 = por %p1828_p2, %p1827_p1 }
   0x8   :  { %p1830_p4 = pnand %p1829_p3, %p1823_p0 }
   0xa   :  { %1833 = shalt.err (!%p1830_p4)
}
   0xb   :  { %s1859_s15 = smov 128   ;;  %s1860_s16 = smov 8  }
   0xc   :  { %23 = dma.hbm_to_vmem [thread:$0]  %s2213_s1, 8192, %s18_s13, [#allocation3], %s1859_s15, %s1859_s15, %s1860_s16  }
   0xd   :  { %1854 = dma.done.wait [#allocation3], 8192  }
   0xe   :  { %1855 = vsyncadd [#allocation3], 4294959104  ;;  %vm67_vm0 = vcmask 64512   ;;  %v61_v0 = vld [vmem:[#allocation2] sm:$0xff]  ;;  %v30_v2 = vld [vmem:[%s2212_s0 + $0x8] sm:$0xff] }
   0xf   :  { %v29_v1 = vld [vmem:[%s2212_s0] sm:$0xff]  ;;  %1488 = vmatprep.subr.mxu0 %v61_v0  ;;  %v31_v3 = vld [vmem:[%s2212_s0 + $0x10] sm:$0xff]  ;;  %v32_v4 = vld [vmem:[%s2212_s0 + $0x18] sm:$0xff] }
  0x10   :  { %1490 = vmatprep.mubr.msk.f32.mxu0 %vm67_vm0, %v29_v1  ;;  %1489 = vmatpush3.msra.mxu0 %v61_v0  ;;  %v33_v5 = vld [vmem:[%s2212_s0 + $0x20] sm:$0xff]  ;;  %v34_v6 = vld [vmem:[%s2212_s0 + $0x28] sm:$0xff]  ;;  %v35_v7 = vld [vmem:[%s2212_s0 + $0x30] sm:$0xff] }
  0x11   :  { %1491 = vmatmul.mubr.msk.f32.vlgmr.msra.gmra.mxu0 %vm67_vm0, %v30_v2  ;;  %v437_v8 = vld [vmem:[#allocation2 + $0xf8] sm:$0xff]  ;;  %v436_v9 = vld [vmem:[#allocation2 + $0xf0] sm:$0xff]  ;;  %v37_v11 = vld [vmem:[%s2212_s0 + $0x40] sm:$0xff] }
  0x12   :  { %1493 = vmatprep.mubr.msk.f32.mxu0 %vm67_vm0, %v31_v3  ;;  %v36_v10 = vld [vmem:[%s2212_s0 + $0x38] sm:$0xff]  ;;  %1538 = vmatprep.subr.mxu1 %v437_v8  ;;  %v435_v12 = vld [vmem:[#allocation2 + $0xe8] sm:$0xff]  ;;  %v434_v13 = vld [vmem:[#allocation2 + $0xe0] sm:$0xff] }
  0x13   :  { %1539 = vmatpush3.msra.mxu1 %v437_v8  ;;  %v38_v14 = vld [vmem:[%s2212_s0 + $0x48] sm:$0xff]  ;;  %v39_v15 = vld [vmem:[%s2212_s0 + $0x50] sm:$0xff]  ;;  %v433_v16 = vld [vmem:[#allocation2 + $0xd8] sm:$0xff] }
  0x14   :  { %1540 = vmatprep.subr.mxu1 %v436_v9  ;;  %v432_v17 = vld [vmem:[#allocation2 + $0xd0] sm:$0xff]  ;;  %v40_v18 = vld [vmem:[%s2212_s0 + $0x58] sm:$0xff]  ;;  %v41_v19 = vld [vmem:[%s2212_s0 + $0x60] sm:$0xff] }
  0x15   :  { %1494 = vmatmul.mubr.msk.f32.gmra.mxu0 %vm67_vm0, %v32_v4  ;;  %1541 = vmatpush3.msra.mxu1 %v436_v9  ;;  %v431_v20 = vld [vmem:[#allocation2 + $0xc8] sm:$0xff]  ;;  %v430_v21 = vld [vmem:[#allocation2 + $0xc0] sm:$0xff]  ;;  %v43_v23 = vld [vmem:[%s2212_s0 + $0x70] sm:$0xff] }
  0x16   :  { %1496 = vmatprep.mubr.msk.f32.mxu0 %vm67_vm0, %v33_v5  ;;  %1542 = vmatprep.subr.mxu1 %v435_v12  ;;  %v42_v22 = vld [vmem:[%s2212_s0 + $0x68] sm:$0xff]  ;;  %v429_v24 = vld [vmem:[#allocation2 + $0xb8] sm:$0xff]  ;;  %v428_v25 = vld [vmem:[#allocation2 + $0xb0] sm:$0xff] }
  0x17   :  { %1543 = vmatpush3.msra.mxu1 %v435_v12  ;;  %v44_v26 = vld [vmem:[%s2212_s0 + $0x78] sm:$0xff]  ;;  %v45_v27 = vld [vmem:[%s2212_s0 + $0x80] sm:$0xff]  ;;  %v427_v28 = vld [vmem:[#allocation2 + $0xa8] sm:$0xff] }
  0x18   :  { %1544 = vmatprep.subr.mxu1 %v434_v13  ;;  %v426_v29 = vld [vmem:[#allocation2 + $0xa0] sm:$0xff]  ;;  %v46_v30 = vld [vmem:[%s2212_s0 + $0x88] sm:$0xff]  ;;  %v47_v31 = vld [vmem:[%s2212_s0 + $0x90] sm:$0xff] }
  0x19   :  { %1497 = vmatmul.mubr.msk.f32.gmra.mxu0 %vm67_vm0, %v34_v6  ;;  %1545 = vmatpush3.msra.mxu1 %v434_v13  ;;  %v48_v32 = vld [vmem:[%s2212_s0 + $0x98] sm:$0xff]  ;;  %v49_v33 = vld [vmem:[%s2212_s0 + $0xa0] sm:$0xff]  ;;  %v50_v34 = vld [vmem:[%s2212_s0 + $0xa8] sm:$0xff] }
  0x1a   :  { %1499 = vmatprep.mubr.msk.f32.mxu0 %vm67_vm0, %v35_v7  ;;  %1546 = vmatprep.subr.mxu1 %v433_v16  ;;  %v51_v35 = vld [vmem:[%s2212_s0 + $0xb0] sm:$0xff]  ;;  %v52_v36 = vld [vmem:[%s2212_s0 + $0xb8] sm:$0xff]  ;;  %v53_v37 = vld [vmem:[%s2212_s0 + $0xc0] sm:$0xff] }
  0x1b   :  { %1547 = vmatpush3.msra.mxu1 %v433_v16  ;;  %v54_v38 = vld [vmem:[%s2212_s0 + $0xc8] sm:$0xff]  ;;  %v55_v39 = vld [vmem:[%s2212_s0 + $0xd0] sm:$0xff]  ;;  %v56_v40 = vld [vmem:[%s2212_s0 + $0xd8] sm:$0xff] }
  0x1c   :  { %1548 = vmatprep.subr.mxu1 %v432_v17  ;;  %v57_v41 = vld [vmem:[%s2212_s0 + $0xe0] sm:$0xff]  ;;  %v58_v42 = vld [vmem:[%s2212_s0 + $0xe8] sm:$0xff]  ;;  %v59_v43 = vld [vmem:[%s2212_s0 + $0xf0] sm:$0xff] }
  0x1d   :  { %1500 = vmatmul.mubr.msk.f32.gmra.mxu0 %vm67_vm0, %v36_v10  ;;  %1549 = vmatpush3.msra.mxu1 %v432_v17  ;;  %v60_v44 = vld [vmem:[%s2212_s0 + $0xf8] sm:$0xff]  ;;  %v424_v46 = vld [vmem:[#allocation2 + $0x90] sm:$0xff]  ;;  %v423_v47 = vld [vmem:[#allocation2 + $0x88] sm:$0xff] }
  0x1e   :  { %1502 = vmatprep.mubr.msk.f32.mxu0 %vm67_vm0, %v37_v11  ;;  %1550 = vmatprep.subr.mxu1 %v431_v20  ;;  %v425_v45 = vld [vmem:[#allocation2 + $0x98] sm:$0xff]  ;;  %v422_v48 = vld [vmem:[#allocation2 + $0x80] sm:$0xff]  ;;  %v715_v50 = vld [vmem:[#allocation2 + $0x170] sm:$0xff] }
  0x1f   :  { %1551 = vmatpush3.msra.mxu1 %v431_v20  ;;  %v716_v49 = vld [vmem:[#allocation2 + $0x178] sm:$0xff]  ;;  %v714_v51 = vld [vmem:[#allocation2 + $0x168] sm:$0xff]  ;;  %v713_v52 = vld [vmem:[#allocation2 + $0x160] sm:$0xff] }
  0x20   :  { %1552 = vmatprep.subr.mxu1 %v430_v21  ;;  %1618 = vmatprep.subr.mxu0 %v716_v49  ;;  %v712_v53 = vld [vmem:[#allocation2 + $0x158] sm:$0xff]  ;;  %v711_v54 = vld [vmem:[#allocation2 + $0x150] sm:$0xff]  ;;  %v710_v55 = vld [vmem:[#allocation2 + $0x148] sm:$0xff] }
  0x21   :  { %1503 = vmatmul.mubr.msk.f32.gmra.mxu0 %vm67_vm0, %v38_v14  ;;  %1553 = vmatpush3.msra.mxu1 %v430_v21  ;;  %v709_v56 = vld [vmem:[#allocation2 + $0x140] sm:$0xff]  ;;  %v708_v57 = vld [vmem:[#allocation2 + $0x138] sm:$0xff]  ;;  %v707_v58 = vld [vmem:[#allocation2 + $0x130] sm:$0xff] }
  0x22   :  { %1505 = vmatprep.mubr.msk.f32.mxu0 %vm67_vm0, %v39_v15  ;;  %1554 = vmatprep.subr.mxu1 %v429_v24  ;;  %v706_v59 = vld [vmem:[#allocation2 + $0x128] sm:$0xff]  ;;  %v705_v60 = vld [vmem:[#allocation2 + $0x120] sm:$0xff]  ;;  %v704_v61 = vld [vmem:[#allocation2 + $0x118] sm:$0xff] }
  0x23   :  { %1555 = vmatpush3.msra.mxu1 %v429_v24  ;;  %1619 = vmatpush3.msra.mxu0 %v716_v49  ;;  %v703_v62 = vld [vmem:[#allocation2 + $0x110] sm:$0xff]  ;;  %v702_v63 = vld [vmem:[#allocation2 + $0x108] sm:$0xff]  ;;  %v2019_v0 = vld [vmem:[%s2214_s2] ss:$0 sm:$0xff] }
  0x24   :  { %1556 = vmatprep.subr.mxu1 %v428_v25  ;;  %1620 = vmatprep.subr.mxu0 %v715_v50 }
  0x25   :  { %1506 = vmatmul.mubr.msk.f32.gmra.mxu0 %vm67_vm0, %v40_v18  ;;  %1557 = vmatpush3.msra.mxu1 %v428_v25 }
  0x26   :  { %1508 = vmatprep.mubr.msk.f32.mxu0 %vm67_vm0, %v41_v19  ;;  %1558 = vmatprep.subr.mxu1 %v427_v28 }
  0x27   :  { %1559 = vmatpush3.msra.mxu1 %v427_v28  ;;  %1621 = vmatpush3.msra.mxu0 %v715_v50 }
  0x28   :  { %1560 = vmatprep.subr.mxu1 %v426_v29  ;;  %1622 = vmatprep.subr.mxu0 %v714_v51 }
  0x29   :  { %1509 = vmatmul.mubr.msk.f32.gmra.mxu0 %vm67_vm0, %v42_v22  ;;  %1561 = vmatpush3.msra.mxu1 %v426_v29 }
  0x2a   :  { %1511 = vmatprep.mubr.msk.f32.mxu0 %vm67_vm0, %v43_v23  ;;  %1562 = vmatprep.subr.mxu1 %v425_v45 }
  0x2b   :  { %1563 = vmatpush3.msra.mxu1 %v425_v45  ;;  %1623 = vmatpush3.msra.mxu0 %v714_v51 }
  0x2c   :  { %1564 = vmatprep.subr.mxu1 %v424_v46  ;;  %1624 = vmatprep.subr.mxu0 %v713_v52 }
  0x2d   :  { %1512 = vmatmul.mubr.msk.f32.gmra.mxu0 %vm67_vm0, %v44_v26  ;;  %1565 = vmatpush3.msra.mxu1 %v424_v46 }
  0x2e   :  { %1514 = vmatprep.mubr.msk.f32.mxu0 %vm67_vm0, %v45_v27  ;;  %1566 = vmatprep.subr.mxu1 %v423_v47 }
  0x2f   :  { %1567 = vmatpush3.msra.mxu1 %v423_v47  ;;  %1625 = vmatpush3.msra.mxu0 %v713_v52 }
  0x30   :  { %1568 = vmatprep.subr.mxu1 %v422_v48  ;;  %1626 = vmatprep.subr.mxu0 %v712_v53 }
  0x31   :  { %1515 = vmatmul.mubr.msk.f32.gmra.mxu0 %vm67_vm0, %v46_v30  ;;  %1569 = vmatpush3.msra.mxu1 %v422_v48 }
  0x32   :  { %1517 = vmatprep.mubr.msk.f32.mxu0 %vm67_vm0, %v47_v31  ;;  %1627 = vmatpush3.msra.mxu0 %v712_v53 }
  0x33   :  { %1628 = vmatprep.subr.mxu0 %v711_v54 }
  0x34   :  { %1629 = vmatpush3.msra.mxu0 %v711_v54 }
  0x35   :  { %1518 = vmatmul.mubr.msk.f32.gmra.mxu0 %vm67_vm0, %v48_v32  ;;  %1630 = vmatprep.subr.mxu0 %v710_v55 }
  0x36   :  { %1520 = vmatprep.mubr.msk.f32.mxu0 %vm67_vm0, %v49_v33  ;;  %1631 = vmatpush3.msra.mxu0 %v710_v55 }
  0x37   :  { %1632 = vmatprep.subr.mxu0 %v709_v56 }
  0x38   :  { %1633 = vmatpush3.msra.mxu0 %v709_v56 }
  0x39   :  { %1521 = vmatmul.mubr.msk.f32.gmra.mxu0 %vm67_vm0, %v50_v34  ;;  %1634 = vmatprep.subr.mxu0 %v708_v57 }
  0x3a   :  { %1523 = vmatprep.mubr.msk.f32.mxu0 %vm67_vm0, %v51_v35  ;;  %1635 = vmatpush3.msra.mxu0 %v708_v57 }
  0x3b   :  { %1636 = vmatprep.subr.mxu0 %v707_v58 }
  0x3c   :  { %1637 = vmatpush3.msra.mxu0 %v707_v58 }
  0x3d   :  { %1524 = vmatmul.mubr.msk.f32.gmra.mxu0 %vm67_vm0, %v52_v36  ;;  %1638 = vmatprep.subr.mxu0 %v706_v59 }
  0x3e   :  { %1526 = vmatprep.mubr.msk.f32.mxu0 %vm67_vm0, %v53_v37  ;;  %1639 = vmatpush3.msra.mxu0 %v706_v59 }
  0x3f   :  { %1640 = vmatprep.subr.mxu0 %v705_v60 }
  0x40   :  { %1641 = vmatpush3.msra.mxu0 %v705_v60 }
  0x41   :  { %1527 = vmatmul.mubr.msk.f32.gmra.mxu0 %vm67_vm0, %v54_v38  ;;  %1642 = vmatprep.subr.mxu0 %v704_v61 }
  0x42   :  { %1529 = vmatprep.mubr.msk.f32.mxu0 %vm67_vm0, %v55_v39  ;;  %1643 = vmatpush3.msra.mxu0 %v704_v61 }
  0x43   :  { %1644 = vmatprep.subr.mxu0 %v703_v62 }
  0x44   :  { %1645 = vmatpush3.msra.mxu0 %v703_v62 }
  0x45   :  { %1530 = vmatmul.mubr.msk.f32.gmra.mxu0 %vm67_vm0, %v56_v40  ;;  %1646 = vmatprep.subr.mxu0 %v702_v63 }
  0x46   :  { %1532 = vmatprep.mubr.msk.f32.mxu0 %vm67_vm0, %v57_v41  ;;  %1647 = vmatpush3.msra.mxu0 %v702_v63 }
  0x49   :  { %1533 = vmatmul.mubr.msk.f32.gmra.mxu0 %vm67_vm0, %v58_v42 }
  0x4a   :  { %1535 = vmatprep.mubr.msk.f32.mxu0 %vm67_vm0, %v59_v43 }
  0x4d   :  { %1536 = vmatmul.mubr.msk.f32.gmra.mxu0 %vm67_vm0, %v60_v44 }
  0xd1   :  { %v1492_v1 = vpop.f32.mrf.mxu0 }
  0xd2   :  { %v236_v2 = vadd.f32 %v1492_v1, %v2019_v0 }
  0xd3   :  { %v230_v3 = vpop.f32.mrf.mxu0 }
  0xd4   :  { %v231_v4 = vadd.f32 %v2019_v0, %v230_v3  ;;  %v390_v7 = vmax.f32 %v236_v2, 0.0 }
  0xd5   :  { %v1495_v5 = vpop.f32.mrf.mxu0 }
  0xd6   :  { %v389_v6 = vmax.f32 %v231_v4, 0.0  ;;  %v246_v8 = vadd.f32 %v1495_v5, %v2019_v0 }
  0xd7   :  { %v240_v9 = vpop.f32.mrf.mxu0 }
  0xd8   :  { %v241_v10 = vadd.f32 %v2019_v0, %v240_v9  ;;  %1570 = vmatprep.mubr.f32.mxu1 %v389_v6  ;;  %v392_v13 = vmax.f32 %v246_v8, 0.0 }
  0xd9   :  { %v1498_v11 = vpop.f32.mrf.mxu0  ;;  %1571 = vmatmul.mubr.f32.vlgmr.msra.gmra.mxu1 %v390_v7 }
  0xda   :  { %v391_v12 = vmax.f32 %v241_v10, 0.0  ;;  %v256_v14 = vadd.f32 %v1498_v11, %v2019_v0 }
  0xdb   :  { %v250_v15 = vpop.f32.mrf.mxu0 }
  0xdc   :  { %v251_v16 = vadd.f32 %v2019_v0, %v250_v15  ;;  %1573 = vmatprep.mubr.f32.mxu1 %v391_v12  ;;  %v394_v19 = vmax.f32 %v256_v14, 0.0 }
  0xdd   :  { %v1501_v17 = vpop.f32.mrf.mxu0  ;;  %1574 = vmatmul.mubr.f32.gmra.mxu1 %v392_v13 }
  0xde   :  { %v393_v18 = vmax.f32 %v251_v16, 0.0  ;;  %v266_v20 = vadd.f32 %v1501_v17, %v2019_v0 }
  0xdf   :  { %v260_v21 = vpop.f32.mrf.mxu0 }
  0xe0   :  { %v261_v22 = vadd.f32 %v2019_v0, %v260_v21  ;;  %1576 = vmatprep.mubr.f32.mxu1 %v393_v18  ;;  %v396_v25 = vmax.f32 %v266_v20, 0.0 }
  0xe1   :  { %v1504_v23 = vpop.f32.mrf.mxu0  ;;  %1577 = vmatmul.mubr.f32.gmra.mxu1 %v394_v19 }
  0xe2   :  { %v395_v24 = vmax.f32 %v261_v22, 0.0  ;;  %v276_v26 = vadd.f32 %v1504_v23, %v2019_v0 }
  0xe3   :  { %v270_v27 = vpop.f32.mrf.mxu0 }
  0xe4   :  { %v271_v28 = vadd.f32 %v2019_v0, %v270_v27  ;;  %1579 = vmatprep.mubr.f32.mxu1 %v395_v24  ;;  %v398_v31 = vmax.f32 %v276_v26, 0.0 }
  0xe5   :  { %v1507_v29 = vpop.f32.mrf.mxu0  ;;  %1580 = vmatmul.mubr.f32.gmra.mxu1 %v396_v25 }
  0xe6   :  { %v397_v30 = vmax.f32 %v271_v28, 0.0  ;;  %v286_v32 = vadd.f32 %v1507_v29, %v2019_v0 }
  0xe7   :  { %v280_v33 = vpop.f32.mrf.mxu0 }
  0xe8   :  { %v281_v34 = vadd.f32 %v2019_v0, %v280_v33  ;;  %1582 = vmatprep.mubr.f32.mxu1 %v397_v30  ;;  %v400_v37 = vmax.f32 %v286_v32, 0.0 }
  0xe9   :  { %v1510_v35 = vpop.f32.mrf.mxu0  ;;  %1583 = vmatmul.mubr.f32.gmra.mxu1 %v398_v31 }
  0xea   :  { %v399_v36 = vmax.f32 %v281_v34, 0.0  ;;  %v296_v38 = vadd.f32 %v1510_v35, %v2019_v0  ;;  %v701_v34 = vld [vmem:[#allocation2 + $0x100] sm:$0xff]  ;;  %v995_v35 = vld [vmem:[#allocation2 + $0x1f8] sm:$0xff] }
  0xeb   :  { %v290_v39 = vpop.f32.mrf.mxu0  ;;  %1648 = vmatprep.subr.mxu0 %v701_v34  ;;  %1778 = vmatprep.subr.mxu1 %v995_v35 }
  0xec   :  { %v291_v40 = vadd.f32 %v2019_v0, %v290_v39  ;;  %1585 = vmatprep.mubr.f32.mxu1 %v399_v36  ;;  %v402_v43 = vmax.f32 %v296_v38, 0.0  ;;  %1649 = vmatpush3.msra.mxu0 %v701_v34  ;;  %v994_v36 = vld [vmem:[#allocation2 + $0x1f0] sm:$0xff]  ;;  %v991_v38 = vld [vmem:[#allocation2 + $0x1d8] sm:$0xff] }
  0xed   :  { %v1513_v41 = vpop.f32.mrf.mxu0  ;;  %1586 = vmatmul.mubr.f32.gmra.mxu1 %v400_v37  ;;  %1698 = vmatprep.subr.mxu0 %v995_v35  ;;  %v993_v37 = vld [vmem:[#allocation2 + $0x1e8] sm:$0xff]  ;;  %v2053_v39 = vld [vmem:[#allocation2 + $0x1d0] sm:$0xff] }
  0xee   :  { %v401_v42 = vmax.f32 %v291_v40, 0.0  ;;  %v306_v44 = vadd.f32 %v1513_v41, %v2019_v0  ;;  %1794 = vmatpush3.msra.mxu1 %v995_v35  ;;  %v2057_v40 = vld [vmem:[#allocation2 + $0x1c8] sm:$0xff]  ;;  %v2061_v41 = vld [vmem:[#allocation2 + $0x1c0] sm:$0xff] }
  0xef   :  { %v300_v45 = vpop.f32.mrf.mxu0  ;;  %1779 = vmatprep.subr.mxu1 %v994_v36 }
  0xf0   :  { %v301_v46 = vadd.f32 %v2019_v0, %v300_v45  ;;  %1588 = vmatprep.mubr.f32.mxu1 %v401_v42  ;;  %v404_v49 = vmax.f32 %v306_v44, 0.0  ;;  %1795 = vmatpush3.msra.mxu1 %v994_v36  ;;  %v2065_v42 = vld [vmem:[#allocation2 + $0x1b8] sm:$0xff]  ;;  %v2073_v44 = vld [vmem:[#allocation2 + $0x1a8] sm:$0xff]  ;;  %v2077_v45 = vld [vmem:[#allocation2 + $0x1a0] sm:$0xff] }
  0xf1   :  { %v1516_v47 = vpop.f32.mrf.mxu0  ;;  %1589 = vmatmul.mubr.f32.gmra.mxu1 %v402_v43  ;;  %1780 = vmatprep.subr.mxu1 %v993_v37  ;;  %v2069_v43 = vld [vmem:[#allocation2 + $0x1b0] sm:$0xff] }
  0xf2   :  { %v403_v48 = vmax.f32 %v301_v46, 0.0  ;;  %v316_v50 = vadd.f32 %v1516_v47, %v2019_v0  ;;  %1796 = vmatpush3.msra.mxu1 %v993_v37  ;;  %v2084_v46 = vld [vmem:[%s2214_s2 + $0x1] ss:$0 sm:$0xff] }
  0xf3   :  { %v310_v51 = vpop.f32.mrf.mxu0 }
  0xf4   :  { %v311_v52 = vadd.f32 %v2019_v0, %v310_v51  ;;  %1591 = vmatprep.mubr.f32.mxu1 %v403_v48  ;;  %v406_v55 = vmax.f32 %v316_v50, 0.0 }
  0xf5   :  { %v1519_v53 = vpop.f32.mrf.mxu0  ;;  %1592 = vmatmul.mubr.f32.gmra.mxu1 %v404_v49 }
  0xf6   :  { %v405_v54 = vmax.f32 %v311_v52, 0.0  ;;  %v326_v56 = vadd.f32 %v1519_v53, %v2019_v0 }
  0xf7   :  { %v320_v57 = vpop.f32.mrf.mxu0 }
  0xf8   :  { %v321_v58 = vadd.f32 %v2019_v0, %v320_v57  ;;  %1594 = vmatprep.mubr.f32.mxu1 %v405_v54  ;;  %v408_v61 = vmax.f32 %v326_v56, 0.0 }
  0xf9   :  { %v1522_v59 = vpop.f32.mrf.mxu0  ;;  %1595 = vmatmul.mubr.f32.gmra.mxu1 %v406_v55 }
  0xfa   :  { %v407_v60 = vmax.f32 %v321_v58, 0.0  ;;  %v336_v62 = vadd.f32 %v1522_v59, %v2019_v0 }
  0xfb   :  { %v330_v63 = vpop.f32.mrf.mxu0 }
  0xfc   :  { %v331_v1 = vadd.f32 %v2019_v0, %v330_v63  ;;  %1597 = vmatprep.mubr.f32.mxu1 %v407_v60  ;;  %v410_v4 = vmax.f32 %v336_v62, 0.0 }
  0xfd   :  { %v1525_v2 = vpop.f32.mrf.mxu0  ;;  %1598 = vmatmul.mubr.f32.gmra.mxu1 %v408_v61 }
  0xfe   :  { %v409_v3 = vmax.f32 %v331_v1, 0.0  ;;  %v346_v5 = vadd.f32 %v1525_v2, %v2019_v0 }
  0xff   :  { %v340_v6 = vpop.f32.mrf.mxu0 }
 0x100   :  { %v341_v7 = vadd.f32 %v2019_v0, %v340_v6  ;;  %1600 = vmatprep.mubr.f32.mxu1 %v409_v3  ;;  %v412_v10 = vmax.f32 %v346_v5, 0.0 }
 0x101   :  { %v1528_v8 = vpop.f32.mrf.mxu0  ;;  %1601 = vmatmul.mubr.f32.gmra.mxu1 %v410_v4 }
 0x102   :  { %v411_v9 = vmax.f32 %v341_v7, 0.0  ;;  %v356_v11 = vadd.f32 %v1528_v8, %v2019_v0 }
 0x103   :  { %v350_v12 = vpop.f32.mrf.mxu0 }
 0x104   :  { %v351_v13 = vadd.f32 %v2019_v0, %v350_v12  ;;  %1603 = vmatprep.mubr.f32.mxu1 %v411_v9  ;;  %v414_v16 = vmax.f32 %v356_v11, 0.0 }
 0x105   :  { %v1531_v14 = vpop.f32.mrf.mxu0  ;;  %1604 = vmatmul.mubr.f32.gmra.mxu1 %v412_v10 }
 0x106   :  { %v413_v15 = vmax.f32 %v351_v13, 0.0  ;;  %v366_v17 = vadd.f32 %v1531_v14, %v2019_v0 }
 0x107   :  { %v360_v18 = vpop.f32.mrf.mxu0 }
 0x108   :  { %v361_v19 = vadd.f32 %v2019_v0, %v360_v18  ;;  %1606 = vmatprep.mubr.f32.mxu1 %v413_v15  ;;  %v416_v22 = vmax.f32 %v366_v17, 0.0 }
 0x109   :  { %v1534_v20 = vpop.f32.mrf.mxu0  ;;  %1607 = vmatmul.mubr.f32.gmra.mxu1 %v414_v16 }
 0x10a   :  { %v415_v21 = vmax.f32 %v361_v19, 0.0  ;;  %v376_v23 = vadd.f32 %v1534_v20, %v2019_v0 }
 0x10b   :  { %v370_v24 = vpop.f32.mrf.mxu0 }
 0x10c   :  { %v371_v25 = vadd.f32 %v2019_v0, %v370_v24  ;;  %1609 = vmatprep.mubr.f32.mxu1 %v415_v21  ;;  %v418_v28 = vmax.f32 %v376_v23, 0.0 }
 0x10d   :  { %v1537_v26 = vpop.f32.mrf.mxu0  ;;  %1610 = vmatmul.mubr.f32.gmra.mxu1 %v416_v22 }
 0x10e   :  { %v417_v27 = vmax.f32 %v371_v25, 0.0  ;;  %v386_v29 = vadd.f32 %v1537_v26, %v2019_v0 }
 0x10f   :  { %v380_v30 = vpop.f32.mrf.mxu0 }
 0x110   :  { %v381_v31 = vadd.f32 %v2019_v0, %v380_v30  ;;  %1612 = vmatprep.mubr.f32.mxu1 %v417_v27  ;;  %v420_v33 = vmax.f32 %v386_v29, 0.0  ;;  %v992_v0 = vld [vmem:[#allocation2 + $0x1e0] sm:$0xff] }
 0x111   :  { %1613 = vmatmul.mubr.f32.gmra.mxu1 %v418_v28  ;;  %1781 = vmatprep.subr.mxu1 %v992_v0 }
 0x112   :  { %v419_v32 = vmax.f32 %v381_v31, 0.0  ;;  %1797 = vmatpush3.msra.mxu1 %v992_v0 }
 0x113   :  { %1782 = vmatprep.subr.mxu1 %v991_v38 }
 0x114   :  { %1615 = vmatprep.mubr.f32.mxu1 %v419_v32  ;;  %1798 = vmatpush3.msra.mxu1 %v991_v38 }
 0x115   :  { %1616 = vmatmul.mubr.f32.gmra.mxu1 %v420_v33  ;;  %1783 = vmatprep.subr.mxu1 %v2053_v39 }
 0x116   :  { %1799 = vmatpush3.msra.mxu1 %v2053_v39 }
 0x117   :  { %1784 = vmatprep.subr.mxu1 %v2057_v40 }
 0x118   :  { %1800 = vmatpush3.msra.mxu1 %v2057_v40 }
 0x119   :  { %1785 = vmatprep.subr.mxu1 %v2061_v41 }
 0x11a   :  { %1801 = vmatpush3.msra.mxu1 %v2061_v41 }
 0x11b   :  { %1786 = vmatprep.subr.mxu1 %v2065_v42 }
 0x11c   :  { %1802 = vmatpush3.msra.mxu1 %v2065_v42 }
 0x11d   :  { %1787 = vmatprep.subr.mxu1 %v2069_v43 }
 0x11e   :  { %1803 = vmatpush3.msra.mxu1 %v2069_v43 }
 0x11f   :  { %1788 = vmatprep.subr.mxu1 %v2073_v44 }
 0x120   :  { %1804 = vmatpush3.msra.mxu1 %v2073_v44 }
 0x121   :  { %1789 = vmatprep.subr.mxu1 %v2077_v45 }
 0x122   :  { %1805 = vmatpush3.msra.mxu1 %v2077_v45 }
 0x199   :  { %v1572_v47 = vpop.f32.mrf.mxu1 }
 0x19a   :  { %v515_v48 = vadd.f32 %v1572_v47, %v2084_v46 }
 0x19b   :  { %v509_v49 = vpop.f32.mrf.mxu1 }
 0x19c   :  { %v510_v50 = vadd.f32 %v2084_v46, %v509_v49  ;;  %v669_v53 = vmax.f32 %v515_v48, 0.0 }
 0x19d   :  { %v1575_v51 = vpop.f32.mrf.mxu1 }
 0x19e   :  { %v668_v52 = vmax.f32 %v510_v50, 0.0  ;;  %v525_v54 = vadd.f32 %v1575_v51, %v2084_v46 }
 0x19f   :  { %v519_v55 = vpop.f32.mrf.mxu1 }
 0x1a0   :  { %v520_v56 = vadd.f32 %v2084_v46, %v519_v55  ;;  %1650 = vmatprep.mubr.f32.mxu0 %v668_v52  ;;  %v671_v59 = vmax.f32 %v525_v54, 0.0 }
 0x1a1   :  { %v1578_v57 = vpop.f32.mrf.mxu1  ;;  %1651 = vmatmul.mubr.f32.vlgmr.msra.gmra.mxu0 %v669_v53 }
 0x1a2   :  { %v670_v58 = vmax.f32 %v520_v56, 0.0  ;;  %1699 = vmatpush3.msra.mxu0 %v995_v35  ;;  %v535_v60 = vadd.f32 %v1578_v57, %v2084_v46 }
 0x1a3   :  { %v529_v61 = vpop.f32.mrf.mxu1  ;;  %1700 = vmatprep.subr.mxu0 %v994_v36 }
 0x1a4   :  { %v530_v62 = vadd.f32 %v2084_v46, %v529_v61  ;;  %1653 = vmatprep.mubr.f32.mxu0 %v670_v58  ;;  %1701 = vmatpush3.msra.mxu0 %v994_v36  ;;  %v673_v2 = vmax.f32 %v535_v60, 0.0 }
 0x1a5   :  { %v1581_v63 = vpop.f32.mrf.mxu1  ;;  %1654 = vmatmul.mubr.f32.gmra.mxu0 %v671_v59  ;;  %1702 = vmatprep.subr.mxu0 %v993_v37 }
 0x1a6   :  { %v672_v1 = vmax.f32 %v530_v62, 0.0  ;;  %1703 = vmatpush3.msra.mxu0 %v993_v37  ;;  %v545_v3 = vadd.f32 %v1581_v63, %v2084_v46 }
 0x1a7   :  { %v539_v4 = vpop.f32.mrf.mxu1  ;;  %1704 = vmatprep.subr.mxu0 %v992_v0 }
 0x1a8   :  { %v540_v5 = vadd.f32 %v2084_v46, %v539_v4  ;;  %1656 = vmatprep.mubr.f32.mxu0 %v672_v1  ;;  %1705 = vmatpush3.msra.mxu0 %v992_v0  ;;  %v675_v8 = vmax.f32 %v545_v3, 0.0 }
 0x1a9   :  { %v1584_v6 = vpop.f32.mrf.mxu1  ;;  %1657 = vmatmul.mubr.f32.gmra.mxu0 %v673_v2  ;;  %1706 = vmatprep.subr.mxu0 %v991_v38 }
 0x1aa   :  { %v674_v7 = vmax.f32 %v540_v5, 0.0  ;;  %1707 = vmatpush3.msra.mxu0 %v991_v38  ;;  %v555_v9 = vadd.f32 %v1584_v6, %v2084_v46 }
 0x1ab   :  { %v549_v10 = vpop.f32.mrf.mxu1  ;;  %1708 = vmatprep.subr.mxu0 %v2053_v39 }
 0x1ac   :  { %v550_v11 = vadd.f32 %v2084_v46, %v549_v10  ;;  %1659 = vmatprep.mubr.f32.mxu0 %v674_v7  ;;  %1709 = vmatpush3.msra.mxu0 %v2053_v39  ;;  %v677_v14 = vmax.f32 %v555_v9, 0.0 }
 0x1ad   :  { %v1587_v12 = vpop.f32.mrf.mxu1  ;;  %1660 = vmatmul.mubr.f32.gmra.mxu0 %v675_v8  ;;  %1710 = vmatprep.subr.mxu0 %v2057_v40 }
 0x1ae   :  { %v676_v13 = vmax.f32 %v550_v11, 0.0  ;;  %1711 = vmatpush3.msra.mxu0 %v2057_v40  ;;  %v565_v15 = vadd.f32 %v1587_v12, %v2084_v46 }
 0x1af   :  { %v559_v16 = vpop.f32.mrf.mxu1  ;;  %1712 = vmatprep.subr.mxu0 %v2061_v41 }
 0x1b0   :  { %v560_v17 = vadd.f32 %v2084_v46, %v559_v16  ;;  %1662 = vmatprep.mubr.f32.mxu0 %v676_v13  ;;  %1713 = vmatpush3.msra.mxu0 %v2061_v41  ;;  %v679_v20 = vmax.f32 %v565_v15, 0.0 }
 0x1b1   :  { %v1590_v18 = vpop.f32.mrf.mxu1  ;;  %1663 = vmatmul.mubr.f32.gmra.mxu0 %v677_v14  ;;  %1714 = vmatprep.subr.mxu0 %v2065_v42 }
 0x1b2   :  { %v678_v19 = vmax.f32 %v560_v17, 0.0  ;;  %1715 = vmatpush3.msra.mxu0 %v2065_v42  ;;  %v575_v21 = vadd.f32 %v1590_v18, %v2084_v46  ;;  %v983_v17 = vld [vmem:[#allocation2 + $0x198] sm:$0xff]  ;;  %v982_v18 = vld [vmem:[#allocation2 + $0x190] sm:$0xff] }
 0x1b3   :  { %v569_v22 = vpop.f32.mrf.mxu1  ;;  %1716 = vmatprep.subr.mxu0 %v2069_v43  ;;  %1790 = vmatprep.subr.mxu1 %v983_v17 }
 0x1b4   :  { %v570_v23 = vadd.f32 %v2084_v46, %v569_v22  ;;  %1665 = vmatprep.mubr.f32.mxu0 %v678_v19  ;;  %1717 = vmatpush3.msra.mxu0 %v2069_v43  ;;  %v681_v26 = vmax.f32 %v575_v21, 0.0  ;;  %v981_v19 = vld [vmem:[#allocation2 + $0x188] sm:$0xff] }
 0x1b5   :  { %v1593_v24 = vpop.f32.mrf.mxu1  ;;  %1666 = vmatmul.mubr.f32.gmra.mxu0 %v679_v20  ;;  %1718 = vmatprep.subr.mxu0 %v2073_v44  ;;  %v2135_v20 = vld [vmem:[%s2214_s2 + $0x2] ss:$0 sm:$0xff] }
 0x1b6   :  { %v680_v25 = vmax.f32 %v570_v23, 0.0  ;;  %1719 = vmatpush3.msra.mxu0 %v2073_v44  ;;  %v585_v27 = vadd.f32 %v1593_v24, %v2084_v46  ;;  %1806 = vmatpush3.msra.mxu1 %v983_v17 }
 0x1b7   :  { %v579_v28 = vpop.f32.mrf.mxu1  ;;  %1720 = vmatprep.subr.mxu0 %v2077_v45  ;;  %1791 = vmatprep.subr.mxu1 %v982_v18 }
 0x1b8   :  { %v580_v29 = vadd.f32 %v2084_v46, %v579_v28  ;;  %1668 = vmatprep.mubr.f32.mxu0 %v680_v25  ;;  %1721 = vmatpush3.msra.mxu0 %v2077_v45  ;;  %v683_v32 = vmax.f32 %v585_v27, 0.0 }
 0x1b9   :  { %v1596_v30 = vpop.f32.mrf.mxu1  ;;  %1669 = vmatmul.mubr.f32.gmra.mxu0 %v681_v26  ;;  %1722 = vmatprep.subr.mxu0 %v983_v17 }
 0x1ba   :  { %v682_v31 = vmax.f32 %v580_v29, 0.0  ;;  %v595_v33 = vadd.f32 %v1596_v30, %v2084_v46  ;;  %1723 = vmatpush3.msra.mxu0 %v983_v17  ;;  %1807 = vmatpush3.msra.mxu1 %v982_v18 }
 0x1bb   :  { %v589_v34 = vpop.f32.mrf.mxu1  ;;  %1724 = vmatprep.subr.mxu0 %v982_v18  ;;  %1792 = vmatprep.subr.mxu1 %v981_v19 }
 0x1bc   :  { %v590_v35 = vadd.f32 %v2084_v46, %v589_v34  ;;  %1671 = vmatprep.mubr.f32.mxu0 %v682_v31  ;;  %v685_v0 = vmax.f32 %v595_v33, 0.0  ;;  %1725 = vmatpush3.msra.mxu0 %v982_v18 }
 0x1bd   :  { %v1599_v36 = vpop.f32.mrf.mxu1  ;;  %1672 = vmatmul.mubr.f32.gmra.mxu0 %v683_v32  ;;  %1726 = vmatprep.subr.mxu0 %v981_v19 }
 0x1be   :  { %v684_v37 = vmax.f32 %v590_v35, 0.0  ;;  %v605_v38 = vadd.f32 %v1599_v36, %v2084_v46  ;;  %1727 = vmatpush3.msra.mxu0 %v981_v19  ;;  %1808 = vmatpush3.msra.mxu1 %v981_v19 }
 0x1bf   :  { %v599_v39 = vpop.f32.mrf.mxu1 }
 0x1c0   :  { %v600_v40 = vadd.f32 %v2084_v46, %v599_v39  ;;  %1674 = vmatprep.mubr.f32.mxu0 %v684_v37  ;;  %v687_v43 = vmax.f32 %v605_v38, 0.0 }
 0x1c1   :  { %v1602_v41 = vpop.f32.mrf.mxu1  ;;  %1675 = vmatmul.mubr.f32.gmra.mxu0 %v685_v0 }
 0x1c2   :  { %v686_v42 = vmax.f32 %v600_v40, 0.0  ;;  %v615_v44 = vadd.f32 %v1602_v41, %v2084_v46 }
 0x1c3   :  { %v609_v45 = vpop.f32.mrf.mxu1 }
 0x1c4   :  { %v610_v47 = vadd.f32 %v2084_v46, %v609_v45  ;;  %1677 = vmatprep.mubr.f32.mxu0 %v686_v42  ;;  %v689_v50 = vmax.f32 %v615_v44, 0.0 }
 0x1c5   :  { %v1605_v48 = vpop.f32.mrf.mxu1  ;;  %1678 = vmatmul.mubr.f32.gmra.mxu0 %v687_v43 }
 0x1c6   :  { %v688_v49 = vmax.f32 %v610_v47, 0.0  ;;  %v625_v51 = vadd.f32 %v1605_v48, %v2084_v46 }
 0x1c7   :  { %v619_v52 = vpop.f32.mrf.mxu1 }
 0x1c8   :  { %v620_v53 = vadd.f32 %v2084_v46, %v619_v52  ;;  %1680 = vmatprep.mubr.f32.mxu0 %v688_v49  ;;  %v691_v56 = vmax.f32 %v625_v51, 0.0 }
 0x1c9   :  { %v1608_v54 = vpop.f32.mrf.mxu1  ;;  %1681 = vmatmul.mubr.f32.gmra.mxu0 %v689_v50 }
 0x1ca   :  { %v690_v55 = vmax.f32 %v620_v53, 0.0  ;;  %v635_v57 = vadd.f32 %v1608_v54, %v2084_v46 }
 0x1cb   :  { %v629_v58 = vpop.f32.mrf.mxu1 }
 0x1cc   :  { %v630_v59 = vadd.f32 %v2084_v46, %v629_v58  ;;  %1683 = vmatprep.mubr.f32.mxu0 %v690_v55  ;;  %v693_v62 = vmax.f32 %v635_v57, 0.0 }
 0x1cd   :  { %v1611_v60 = vpop.f32.mrf.mxu1  ;;  %1684 = vmatmul.mubr.f32.gmra.mxu0 %v691_v56 }
 0x1ce   :  { %v692_v61 = vmax.f32 %v630_v59, 0.0  ;;  %v645_v63 = vadd.f32 %v1611_v60, %v2084_v46 }
 0x1cf   :  { %v639_v1 = vpop.f32.mrf.mxu1 }
 0x1d0   :  { %v640_v2 = vadd.f32 %v2084_v46, %v639_v1  ;;  %1686 = vmatprep.mubr.f32.mxu0 %v692_v61  ;;  %v695_v5 = vmax.f32 %v645_v63, 0.0 }
 0x1d1   :  { %v1614_v3 = vpop.f32.mrf.mxu1  ;;  %1687 = vmatmul.mubr.f32.gmra.mxu0 %v693_v62 }
 0x1d2   :  { %v694_v4 = vmax.f32 %v640_v2, 0.0  ;;  %v655_v6 = vadd.f32 %v1614_v3, %v2084_v46 }
 0x1d3   :  { %v649_v7 = vpop.f32.mrf.mxu1 }
 0x1d4   :  { %v650_v8 = vadd.f32 %v2084_v46, %v649_v7  ;;  %1689 = vmatprep.mubr.f32.mxu0 %v694_v4  ;;  %v697_v11 = vmax.f32 %v655_v6, 0.0 }
 0x1d5   :  { %v1617_v9 = vpop.f32.mrf.mxu1  ;;  %1690 = vmatmul.mubr.f32.gmra.mxu0 %v695_v5 }
 0x1d6   :  { %v696_v10 = vmax.f32 %v650_v8, 0.0  ;;  %v665_v12 = vadd.f32 %v1617_v9, %v2084_v46 }
 0x1d7   :  { %v659_v13 = vpop.f32.mrf.mxu1 }
 0x1d8   :  { %v660_v14 = vadd.f32 %v2084_v46, %v659_v13  ;;  %1692 = vmatprep.mubr.f32.mxu0 %v696_v10  ;;  %v699_v16 = vmax.f32 %v665_v12, 0.0  ;;  %v980_v46 = vld [vmem:[#allocation2 + $0x180] sm:$0xff] }
 0x1d9   :  { %1693 = vmatmul.mubr.f32.gmra.mxu0 %v697_v11  ;;  %1728 = vmatprep.subr.mxu0 %v980_v46 }
 0x1da   :  { %v698_v15 = vmax.f32 %v660_v14, 0.0  ;;  %1793 = vmatprep.subr.mxu1 %v980_v46  ;;  %1729 = vmatpush3.msra.mxu0 %v980_v46 }
 0x1db   :  { %1809 = vmatpush3.msra.mxu1 %v980_v46 }
 0x1dc   :  { %1695 = vmatprep.mubr.f32.mxu0 %v698_v15 }
 0x1dd   :  { %1696 = vmatmul.mubr.f32.gmra.mxu0 %v699_v16 }
 0x261   :  { %v1652_v21 = vpop.f32.mrf.mxu0 }
 0x262   :  { %v794_v22 = vadd.f32 %v1652_v21, %v2135_v20 }
 0x263   :  { %v788_v23 = vpop.f32.mrf.mxu0 }
 0x264   :  { %v789_v24 = vadd.f32 %v2135_v20, %v788_v23  ;;  %v948_v27 = vmax.f32 %v794_v22, 0.0 }
 0x265   :  { %v1655_v25 = vpop.f32.mrf.mxu0 }
 0x266   :  { %v947_v26 = vmax.f32 %v789_v24, 0.0  ;;  %v804_v28 = vadd.f32 %v1655_v25, %v2135_v20 }
 0x267   :  { %v798_v29 = vpop.f32.mrf.mxu0 }
 0x268   :  { %v799_v30 = vadd.f32 %v2135_v20, %v798_v29  ;;  %1730 = vmatprep.mubr.f32.mxu0 %v947_v26  ;;  %v950_v33 = vmax.f32 %v804_v28, 0.0 }
 0x269   :  { %v1658_v31 = vpop.f32.mrf.mxu0  ;;  %1731 = vmatmul.mubr.f32.vlgmr.msra.gmra.mxu0 %v948_v27 }
 0x26a   :  { %v949_v32 = vmax.f32 %v799_v30, 0.0  ;;  %v814_v34 = vadd.f32 %v1658_v31, %v2135_v20 }
 0x26b   :  { %v808_v35 = vpop.f32.mrf.mxu0 }
 0x26c   :  { %v809_v36 = vadd.f32 %v2135_v20, %v808_v35  ;;  %1733 = vmatprep.mubr.f32.mxu0 %v949_v32  ;;  %v952_v38 = vmax.f32 %v814_v34, 0.0 }
 0x26d   :  { %v1661_v37 = vpop.f32.mrf.mxu0  ;;  %1734 = vmatmul.mubr.f32.gmra.mxu0 %v950_v33 }
 0x26e   :  { %v951_v0 = vmax.f32 %v809_v36, 0.0  ;;  %v824_v39 = vadd.f32 %v1661_v37, %v2135_v20 }
 0x26f   :  { %v818_v40 = vpop.f32.mrf.mxu0 }
 0x270   :  { %v819_v41 = vadd.f32 %v2135_v20, %v818_v40  ;;  %1736 = vmatprep.mubr.f32.mxu0 %v951_v0  ;;  %v954_v44 = vmax.f32 %v824_v39, 0.0 }
 0x271   :  { %v1664_v42 = vpop.f32.mrf.mxu0  ;;  %1737 = vmatmul.mubr.f32.gmra.mxu0 %v952_v38 }
 0x272   :  { %v953_v43 = vmax.f32 %v819_v41, 0.0  ;;  %v834_v45 = vadd.f32 %v1664_v42, %v2135_v20 }
 0x273   :  { %v828_v47 = vpop.f32.mrf.mxu0 }
 0x274   :  { %v829_v48 = vadd.f32 %v2135_v20, %v828_v47  ;;  %1739 = vmatprep.mubr.f32.mxu1 %v953_v43  ;;  %v956_v51 = vmax.f32 %v834_v45, 0.0 }
 0x275   :  { %v1667_v49 = vpop.f32.mrf.mxu0  ;;  %1740 = vmatmul.mubr.f32.vlgmr.msra.gmra.mxu1 %v954_v44 }
 0x276   :  { %v955_v50 = vmax.f32 %v829_v48, 0.0  ;;  %v844_v52 = vadd.f32 %v1667_v49, %v2135_v20 }
 0x277   :  { %v838_v53 = vpop.f32.mrf.mxu0 }
 0x278   :  { %v839_v54 = vadd.f32 %v2135_v20, %v838_v53  ;;  %1742 = vmatprep.mubr.f32.mxu1 %v955_v50  ;;  %v958_v57 = vmax.f32 %v844_v52, 0.0 }
 0x279   :  { %v1670_v55 = vpop.f32.mrf.mxu0  ;;  %1743 = vmatmul.mubr.f32.gmra.mxu1 %v956_v51 }
 0x27a   :  { %v957_v56 = vmax.f32 %v839_v54, 0.0  ;;  %v854_v58 = vadd.f32 %v1670_v55, %v2135_v20  ;;  %v2172_v54 = vld [vmem:[%s2214_s2 + $0x3] ss:$0 sm:$0xff]  ;;  %s1861_s2 = smov [#allocation5]  }
 0x27b   :  { %v848_v59 = vpop.f32.mrf.mxu0  ;;  %s1263_s10 = sshll.u32 %s1861_s2, 4  ;;  %s1264_s10 = int_to_ptr.vmem [resolvable:$true] %s1263_s10 }
 0x27c   :  { %v849_v60 = vadd.f32 %v2135_v20, %v848_v59  ;;  %1745 = vmatprep.mubr.f32.mxu1 %v957_v56  ;;  %v960_v63 = vmax.f32 %v854_v58, 0.0  ;;  %s1834_s11 = scalar_lea.vmem %s1264_s10, 4096  ;;  %p1839_p6 = scmp.lt.s32.totalorder %s1264_s10, %s1264_s10 }
 0x27d   :  { %v1673_v61 = vpop.f32.mrf.mxu0  ;;  %1746 = vmatmul.mubr.f32.gmra.mxu1 %v958_v57  ;;  %p1835_p5 = scmp.ne.s32.totalorder %s1264_s10, %s1834_s11  ;;  %p1840_p7 = scmp.lt.s32.totalorder %s1834_s11, %s1834_s11 }
 0x27e   :  { %v959_v62 = vmax.f32 %v849_v60, 0.0  ;;  %v864_v1 = vadd.f32 %v1673_v61, %v2135_v20 }
 0x27f   :  { %v858_v2 = vpop.f32.mrf.mxu0  ;;  %p1841_p8 = por %p1840_p7, %p1839_p6 }
 0x280   :  { %v859_v3 = vadd.f32 %v2135_v20, %v858_v2  ;;  %1748 = vmatprep.mubr.f32.mxu1 %v959_v62  ;;  %v962_v6 = vmax.f32 %v864_v1, 0.0 }
 0x281   :  { %v1676_v4 = vpop.f32.mrf.mxu0  ;;  %1749 = vmatmul.mubr.f32.gmra.mxu1 %v960_v63  ;;  %p1842_p9 = pnand %p1841_p8, %p1835_p5 }
 0x282   :  { %v961_v5 = vmax.f32 %v859_v3, 0.0  ;;  %v874_v7 = vadd.f32 %v1676_v4, %v2135_v20 }
 0x283   :  { %v868_v8 = vpop.f32.mrf.mxu0 }
 0x284   :  { %v869_v9 = vadd.f32 %v2135_v20, %v868_v8  ;;  %1751 = vmatprep.mubr.f32.mxu1 %v961_v5  ;;  %v964_v12 = vmax.f32 %v874_v7, 0.0 }
 0x285   :  { %v1679_v10 = vpop.f32.mrf.mxu0  ;;  %1752 = vmatmul.mubr.f32.gmra.mxu1 %v962_v6 }
 0x286   :  { %v963_v11 = vmax.f32 %v869_v9, 0.0  ;;  %v884_v13 = vadd.f32 %v1679_v10, %v2135_v20 }
 0x287   :  { %v878_v14 = vpop.f32.mrf.mxu0 }
 0x288   :  { %v879_v15 = vadd.f32 %v2135_v20, %v878_v14  ;;  %1754 = vmatprep.mubr.f32.mxu1 %v963_v11  ;;  %v966_v18 = vmax.f32 %v884_v13, 0.0 }
 0x289   :  { %v1682_v16 = vpop.f32.mrf.mxu0  ;;  %1755 = vmatmul.mubr.f32.gmra.mxu1 %v964_v12 }
 0x28a   :  { %v965_v17 = vmax.f32 %v879_v15, 0.0  ;;  %v894_v19 = vadd.f32 %v1682_v16, %v2135_v20 }
 0x28b   :  { %v888_v46 = vpop.f32.mrf.mxu0 }
 0x28c   :  { %v889_v21 = vadd.f32 %v2135_v20, %v888_v46  ;;  %1757 = vmatprep.mubr.f32.mxu1 %v965_v17  ;;  %v968_v24 = vmax.f32 %v894_v19, 0.0 }
 0x28d   :  { %v1685_v22 = vpop.f32.mrf.mxu0  ;;  %1758 = vmatmul.mubr.f32.gmra.mxu1 %v966_v18 }
 0x28e   :  { %v967_v23 = vmax.f32 %v889_v21, 0.0  ;;  %v904_v25 = vadd.f32 %v1685_v22, %v2135_v20 }
 0x28f   :  { %v898_v26 = vpop.f32.mrf.mxu0 }
 0x290   :  { %v899_v27 = vadd.f32 %v2135_v20, %v898_v26  ;;  %1760 = vmatprep.mubr.f32.mxu1 %v967_v23  ;;  %v970_v30 = vmax.f32 %v904_v25, 0.0 }
 0x291   :  { %v1688_v28 = vpop.f32.mrf.mxu0  ;;  %1761 = vmatmul.mubr.f32.gmra.mxu1 %v968_v24 }
 0x292   :  { %v969_v29 = vmax.f32 %v899_v27, 0.0  ;;  %v914_v31 = vadd.f32 %v1688_v28, %v2135_v20 }
 0x293   :  { %v908_v32 = vpop.f32.mrf.mxu0 }
 0x294   :  { %v909_v33 = vadd.f32 %v2135_v20, %v908_v32  ;;  %1763 = vmatprep.mubr.f32.mxu1 %v969_v29  ;;  %v972_v36 = vmax.f32 %v914_v31, 0.0 }
 0x295   :  { %v1691_v34 = vpop.f32.mrf.mxu0  ;;  %1764 = vmatmul.mubr.f32.gmra.mxu1 %v970_v30 }
 0x296   :  { %v971_v35 = vmax.f32 %v909_v33, 0.0  ;;  %v924_v37 = vadd.f32 %v1691_v34, %v2135_v20 }
 0x297   :  { %v918_v0 = vpop.f32.mrf.mxu0 }
 0x298   :  { %v919_v38 = vadd.f32 %v2135_v20, %v918_v0  ;;  %1766 = vmatprep.mubr.f32.mxu1 %v971_v35  ;;  %v974_v41 = vmax.f32 %v924_v37, 0.0 }
 0x299   :  { %v1694_v39 = vpop.f32.mrf.mxu0  ;;  %1767 = vmatmul.mubr.f32.gmra.mxu1 %v972_v36 }
 0x29a   :  { %v973_v40 = vmax.f32 %v919_v38, 0.0  ;;  %v934_v42 = vadd.f32 %v1694_v39, %v2135_v20 }
 0x29b   :  { %v928_v43 = vpop.f32.mrf.mxu0 }
 0x29c   :  { %v929_v44 = vadd.f32 %v2135_v20, %v928_v43  ;;  %1769 = vmatprep.mubr.f32.mxu1 %v973_v40  ;;  %v976_v48 = vmax.f32 %v934_v42, 0.0 }
 0x29d   :  { %v1697_v45 = vpop.f32.mrf.mxu0  ;;  %1770 = vmatmul.mubr.f32.gmra.mxu1 %v974_v41 }
 0x29e   :  { %v975_v47 = vmax.f32 %v929_v44, 0.0  ;;  %v944_v49 = vadd.f32 %v1697_v45, %v2135_v20 }
 0x29f   :  { %v938_v50 = vpop.f32.mrf.mxu0 }
 0x2a0   :  { %v939_v51 = vadd.f32 %v2135_v20, %v938_v50  ;;  %1772 = vmatprep.mubr.f32.mxu1 %v975_v47  ;;  %v978_v53 = vmax.f32 %v944_v49, 0.0 }
 0x2a1   :  { %1773 = vmatmul.mubr.f32.gmra.mxu1 %v976_v48 }
 0x2a2   :  { %v977_v52 = vmax.f32 %v939_v51, 0.0 }
 0x2a4   :  { %1775 = vmatprep.mubr.f32.mxu1 %v977_v52 }
 0x2a5   :  { %1776 = vmatmul.mubr.f32.gmra.mxu1 %v978_v53 }
 0x329   :  { %v1732_v55 = vpop.f32.mrf.mxu0 }
 0x32a   :  { %v1073_v56 = vadd.f32 %v1732_v55, %v2172_v54 }
 0x32b   :  { %v1067_v57 = vpop.f32.mrf.mxu0 }
 0x32c   :  { %1227 = vst [vmem:[#allocation5 + $0x8] sm:$0xff] %v1073_v56  ;;  %v1068_v58 = vadd.f32 %v2172_v54, %v1067_v57 }
 0x32d   :  { %v1735_v59 = vpop.f32.mrf.mxu0 }
 0x32e   :  { %1226 = vst [vmem:[#allocation5] sm:$0xff] %v1068_v58  ;;  %v1083_v20 = vadd.f32 %v1735_v59, %v2172_v54 }
 0x32f   :  { %v1077_v60 = vpop.f32.mrf.mxu0 }
 0x330   :  { %1229 = vst [vmem:[#allocation5 + $0x18] sm:$0xff] %v1083_v20  ;;  %v1078_v61 = vadd.f32 %v2172_v54, %v1077_v60 }
 0x331   :  { %v1738_v62 = vpop.f32.mrf.mxu0 }
 0x332   :  { %1228 = vst [vmem:[#allocation5 + $0x10] sm:$0xff] %v1078_v61  ;;  %v1093_v63 = vadd.f32 %v1738_v62, %v2172_v54 }
 0x333   :  { %v1087_v1 = vpop.f32.mrf.mxu0 }
 0x334   :  { %1231 = vst [vmem:[#allocation5 + $0x28] sm:$0xff] %v1093_v63  ;;  %v1088_v2 = vadd.f32 %v2172_v54, %v1087_v1 }
 0x335   :  { %v1741_v3 = vpop.f32.mrf.mxu1 }
 0x336   :  { %1230 = vst [vmem:[#allocation5 + $0x20] sm:$0xff] %v1088_v2  ;;  %v1103_v4 = vadd.f32 %v1741_v3, %v2172_v54 }
 0x337   :  { %v1097_v5 = vpop.f32.mrf.mxu1 }
 0x338   :  { %1233 = vst [vmem:[#allocation5 + $0x38] sm:$0xff] %v1103_v4  ;;  %v1098_v6 = vadd.f32 %v2172_v54, %v1097_v5 }
 0x339   :  { %v1744_v7 = vpop.f32.mrf.mxu1 }
 0x33a   :  { %1232 = vst [vmem:[#allocation5 + $0x30] sm:$0xff] %v1098_v6  ;;  %v1113_v8 = vadd.f32 %v1744_v7, %v2172_v54 }
 0x33b   :  { %v1107_v9 = vpop.f32.mrf.mxu1 }
 0x33c   :  { %1235 = vst [vmem:[#allocation5 + $0x48] sm:$0xff] %v1113_v8  ;;  %v1108_v10 = vadd.f32 %v2172_v54, %v1107_v9 }
 0x33d   :  { %v1747_v11 = vpop.f32.mrf.mxu1 }
 0x33e   :  { %1234 = vst [vmem:[#allocation5 + $0x40] sm:$0xff] %v1108_v10  ;;  %v1123_v12 = vadd.f32 %v1747_v11, %v2172_v54 }
 0x33f   :  { %v1117_v13 = vpop.f32.mrf.mxu1 }
 0x340   :  { %1237 = vst [vmem:[#allocation5 + $0x58] sm:$0xff] %v1123_v12  ;;  %v1118_v14 = vadd.f32 %v2172_v54, %v1117_v13 }
 0x341   :  { %v1750_v15 = vpop.f32.mrf.mxu1 }
 0x342   :  { %1236 = vst [vmem:[#allocation5 + $0x50] sm:$0xff] %v1118_v14  ;;  %v1133_v16 = vadd.f32 %v1750_v15, %v2172_v54 }
 0x343   :  { %v1127_v17 = vpop.f32.mrf.mxu1 }
 0x344   :  { %1239 = vst [vmem:[#allocation5 + $0x68] sm:$0xff] %v1133_v16  ;;  %v1128_v18 = vadd.f32 %v2172_v54, %v1127_v17 }
 0x345   :  { %v1753_v19 = vpop.f32.mrf.mxu1 }
 0x346   :  { %1238 = vst [vmem:[#allocation5 + $0x60] sm:$0xff] %v1128_v18  ;;  %v1143_v46 = vadd.f32 %v1753_v19, %v2172_v54 }
 0x347   :  { %v1137_v21 = vpop.f32.mrf.mxu1 }
 0x348   :  { %1241 = vst [vmem:[#allocation5 + $0x78] sm:$0xff] %v1143_v46  ;;  %v1138_v22 = vadd.f32 %v2172_v54, %v1137_v21 }
 0x349   :  { %v1756_v23 = vpop.f32.mrf.mxu1 }
 0x34a   :  { %1240 = vst [vmem:[#allocation5 + $0x70] sm:$0xff] %v1138_v22  ;;  %v1153_v24 = vadd.f32 %v1756_v23, %v2172_v54 }
 0x34b   :  { %v1147_v25 = vpop.f32.mrf.mxu1 }
 0x34c   :  { %1243 = vst [vmem:[#allocation5 + $0x88] sm:$0xff] %v1153_v24  ;;  %v1148_v26 = vadd.f32 %v2172_v54, %v1147_v25 }
 0x34d   :  { %v1759_v27 = vpop.f32.mrf.mxu1 }
 0x34e   :  { %1242 = vst [vmem:[#allocation5 + $0x80] sm:$0xff] %v1148_v26  ;;  %v1163_v28 = vadd.f32 %v1759_v27, %v2172_v54 }
 0x34f   :  { %v1157_v29 = vpop.f32.mrf.mxu1 }
 0x350   :  { %1245 = vst [vmem:[#allocation5 + $0x98] sm:$0xff] %v1163_v28  ;;  %v1158_v30 = vadd.f32 %v2172_v54, %v1157_v29 }
 0x351   :  { %v1762_v31 = vpop.f32.mrf.mxu1 }
 0x352   :  { %1244 = vst [vmem:[#allocation5 + $0x90] sm:$0xff] %v1158_v30  ;;  %v1173_v32 = vadd.f32 %v1762_v31, %v2172_v54 }
 0x353   :  { %v1167_v33 = vpop.f32.mrf.mxu1 }
 0x354   :  { %1247 = vst [vmem:[#allocation5 + $0xa8] sm:$0xff] %v1173_v32  ;;  %v1168_v34 = vadd.f32 %v2172_v54, %v1167_v33 }
 0x355   :  { %v1765_v35 = vpop.f32.mrf.mxu1 }
 0x356   :  { %1246 = vst [vmem:[#allocation5 + $0xa0] sm:$0xff] %v1168_v34  ;;  %v1183_v36 = vadd.f32 %v1765_v35, %v2172_v54 }
 0x357   :  { %v1177_v37 = vpop.f32.mrf.mxu1 }
 0x358   :  { %1249 = vst [vmem:[#allocation5 + $0xb8] sm:$0xff] %v1183_v36  ;;  %v1178_v0 = vadd.f32 %v2172_v54, %v1177_v37 }
 0x359   :  { %v1768_v38 = vpop.f32.mrf.mxu1 }
 0x35a   :  { %1248 = vst [vmem:[#allocation5 + $0xb0] sm:$0xff] %v1178_v0  ;;  %v1193_v39 = vadd.f32 %v1768_v38, %v2172_v54 }
 0x35b   :  { %v1187_v40 = vpop.f32.mrf.mxu1 }
 0x35c   :  { %1251 = vst [vmem:[#allocation5 + $0xc8] sm:$0xff] %v1193_v39  ;;  %v1188_v41 = vadd.f32 %v2172_v54, %v1187_v40 }
 0x35d   :  { %v1771_v42 = vpop.f32.mrf.mxu1 }
 0x35e   :  { %1250 = vst [vmem:[#allocation5 + $0xc0] sm:$0xff] %v1188_v41  ;;  %v1203_v43 = vadd.f32 %v1771_v42, %v2172_v54 }
 0x35f   :  { %v1197_v44 = vpop.f32.mrf.mxu1 }
 0x360   :  { %1253 = vst [vmem:[#allocation5 + $0xd8] sm:$0xff] %v1203_v43  ;;  %v1198_v45 = vadd.f32 %v2172_v54, %v1197_v44 }
 0x361   :  { %v1774_v47 = vpop.f32.mrf.mxu1 }
 0x362   :  { %1252 = vst [vmem:[#allocation5 + $0xd0] sm:$0xff] %v1198_v45  ;;  %v1213_v48 = vadd.f32 %v1774_v47, %v2172_v54 }
 0x363   :  { %v1207_v49 = vpop.f32.mrf.mxu1 }
 0x364   :  { %1255 = vst [vmem:[#allocation5 + $0xe8] sm:$0xff] %v1213_v48  ;;  %v1208_v50 = vadd.f32 %v2172_v54, %v1207_v49 }
 0x365   :  { %v1777_v51 = vpop.f32.mrf.mxu1 }
 0x366   :  { %1254 = vst [vmem:[#allocation5 + $0xe0] sm:$0xff] %v1208_v50  ;;  %v1223_v52 = vadd.f32 %v1777_v51, %v2172_v54 }
 0x367   :  { %v1217_v53 = vpop.f32.mrf.mxu1 }
 0x368   :  { %1257 = vst [vmem:[#allocation5 + $0xf8] sm:$0xff] %v1223_v52  ;;  %v1218_v55 = vadd.f32 %v2172_v54, %v1217_v53 }
 0x36a   :  { %1256 = vst [vmem:[#allocation5 + $0xf0] sm:$0xff] %v1218_v55 }
 0x36b   :  { %1845 = shalt.err (!%p1842_p9)
}
 0x36c   :  { %1269 = dma.vmem_to_hbm [thread:$0]  %s1264_s10, 4096, %s2215_s3, [#allocation4], %s1859_s15, %s1859_s15, %s1860_s16  }
 0x36d   :  { %1856 = dma.done.wait [#allocation4], 4096  }
 0x36e   :  { %1857 = vsyncadd [#allocation4], 4294963200 }
 0x36f   :  { %1273 = vsyncpa [#allocation3], 1 }
 0x370   :  { %1274 = vsyncpa [#allocation4], 1 }

</bundles_post_ra>
